<compile_context>
chip_gen: v7x
topology: tpu7x:2x2x1
jax: 0.10.0
libtpu: 0.0.40
codegen_flags: <defaults>
</compile_context>

<pallas_src>
import jax
import jax.numpy as jnp
from jax.experimental import pallas as pl
from jax.experimental.pallas import tpu as pltpu

# ---- model hyper-params (small demo sizes; real module uses INPUT_DIM=49920) ----
N_ENSEMBLE = 32
H1, H2, H3, H4 = 128, 64, 32, 8
OUT_DIM = 1

_VMEM_CAP_BYTES = 56 * 1024 * 1024      # stays under v7x's 64 MiB physical VMEM


def _ensemble_mlp_kernel(x_ref,                      # (B, D)         bf16, resident
                         w1_ref,                     # (1, D, H1)     bf16, streamed per e
                         b1_ref,                     # (E, 1, H1)     f32, resident
                         w2_ref, b2_ref,             # (E, H1, H2) / (E, 1, H2)
                         w3_ref, b3_ref,             # (E, H2, H3) / (E, 1, H3)
                         w4_ref, b4_ref,             # (E, H3, H4) / (E, 1, H4)
                         w5_ref, b5_ref,             # (E, H4, 1)  / (E, 1, 1)
                         out_ref):                   # (1, B, OUT_DIM)
    """grid = (E,): one ensemble member per step, whole layer-1 slab at once."""
    e = pl.program_id(0)

    # Layer 1: (B, D) @ (D, 128), bf16 operands, f32 accumulate.
    h = jnp.dot(x_ref[...], w1_ref[0],
                preferred_element_type=jnp.float32) + b1_ref[e]
    h = jnp.maximum(h, 0.0)                                               # (B, 128)
    h = jnp.maximum(
        jnp.dot(h, w2_ref[e], preferred_element_type=jnp.float32) + b2_ref[e],
        0.0)                                                              # (B, 64)
    h = jnp.maximum(
        jnp.dot(h, w3_ref[e], preferred_element_type=jnp.float32) + b3_ref[e],
        0.0)                                                              # (B, 32)
    h = jnp.maximum(
        jnp.dot(h, w4_ref[e], preferred_element_type=jnp.float32) + b4_ref[e],
        0.0)                                                              # (B, 8)
    y = jnp.dot(h, w5_ref[e], preferred_element_type=jnp.float32) + b5_ref[e]
    out_ref[0] = y                                                        # (B, 1)


@jax.jit
def avi_task2_forward(features, params):
    """Reproduces AVIBASELINE_TASK2.forward.

    Returns (features_flat, ensemble_mean, interloss) like the torch module.
    """
    B = features.shape[0]
    x = features.reshape(B, -1).astype(jnp.float32)              # (B, D) f32
    D = x.shape[1]

    (w1, b1), (w2, b2), (w3, b3), (w4, b4), (w5, b5) = params
    E = w1.shape[0]

    # Stream the big layer in bf16 (halves HBM traffic; MXU-native everywhere).
    x_bf = x.astype(jnp.bfloat16)
    w1_bf = w1.astype(jnp.bfloat16)   # no-op if init_params already stored bf16

    # --- VMEM budget (BlockSpec inputs/outputs are double-buffered by default) ---
    small = (b1, w2, b2, w3, b3, w4, b4, w5, b5)
    w1_tile_bytes = D * H1 * 2                                    # bf16 slab per e
    x_bytes = B * D * 2
    resident_bytes = sum(int(a.size) * a.dtype.itemsize for a in small)
    out_bytes = B * OUT_DIM * 4
    est = 2 * (w1_tile_bytes + x_bytes + resident_bytes + out_bytes)
    vmem_limit = int(min(_VMEM_CAP_BYTES, max(est + (4 << 20), 16 << 20)))
    assert est + (4 << 20) <= _VMEM_CAP_BYTES, (
        f"full-D working set (~{est/2**20:.1f} MiB double-buffered) exceeds the "
        f"VMEM budget; re-enable K-tiling for this (D={D}, B={B}) configuration")

    def resident(arr):
        # Whole array VMEM-resident for the full grid (constant block index
        # => single DMA, no per-step descriptor traffic).
        zeros = (0,) * arr.ndim
        return pl.BlockSpec(arr.shape, lambda e, _z=zeros: _z)

    outputs = pl.pallas_call(
        _ensemble_mlp_kernel,
        out_shape=jax.ShapeDtypeStruct((E, B, OUT_DIM), jnp.float32),
        grid_spec=pltpu.PrefetchScalarGridSpec(
            num_scalar_prefetch=0,
            grid=(E,),
            in_specs=[
                resident(x_bf),                                    # x, fetched once
                pl.BlockSpec((1, D, H1), lambda e: (e, 0, 0)),     # W1[e] slab
                resident(b1),
                resident(w2), resident(b2),
                resident(w3), resident(b3),
                resident(w4), resident(b4),
                resident(w5), resident(b5),
            ],
            out_specs=pl.BlockSpec((1, B, OUT_DIM), lambda e: (e, 0, 0)),
        ),
        compiler_params=pltpu.CompilerParams(
            # E is independent work -> megacore-shardable on v7x (no-op on 1-TC chips).
            dimension_semantics=("parallel",),
            vmem_limit_bytes=vmem_limit,
        ),
    )(x_bf, w1_bf, b1, w2, b2, w3, b3, w4, b4, w5, b5)               # (E, B, 1)

    ensemble_mean = jnp.mean(outputs, axis=0)                         # (B, 1)
    interloss = jnp.float32(0.0)
    return x, ensemble_mean, interloss


def init_params(key, input_dim):
    """Deterministic torch.nn.Linear-style init, stacked across the ensemble.

    Layer-1 weights are stored in bf16 once at init (streamed dtype); the
    small layers stay f32.
    """
    dims = [(input_dim, H1), (H1, H2), (H2, H3), (H3, H4), (H4, OUT_DIM)]
    params = []
    for li, (fan_in, fan_out) in enumerate(dims):
        key, kw, kb = jax.random.split(key, 3)
        bound = 1.0 / (fan_in ** 0.5)
        w = jax.random.uniform(kw, (N_ENSEMBLE, fan_in, fan_out),
                               jnp.float32, -bound, bound)
        b = jax.random.uniform(kb, (N_ENSEMBLE, 1, fan_out),
                               jnp.float32, -bound, bound)
        if li == 0:
            w = w.astype(jnp.bfloat16)
        params.append((w, b))
    return tuple(params)


def _reference_forward(features, params):
    """Pure-JAX reference (same bf16 quantization on layer 1 as the kernel)."""
    B = features.shape[0]
    x = features.reshape(B, -1).astype(jnp.float32)
    x_bf = x.astype(jnp.bfloat16)
    (w1, b1) = params[0]
    rest = params[1:]
    outs = []
    for e in range(N_ENSEMBLE):
        h = jnp.dot(x_bf, w1[e], preferred_element_type=jnp.float32) + b1[e]
        h = jnp.maximum(h, 0.0)
        for li, (w, b) in enumerate(rest):
            h = jnp.dot(h, w[e], preferred_element_type=jnp.float32) + b[e]
            if li < len(rest) - 1:
                h = jnp.maximum(h, 0.0)
        outs.append(h)
    outs = jnp.stack(outs, axis=0)
    return x, outs.mean(axis=0), jnp.float32(0.0)


if __name__ == "__main__":
    key = jax.random.PRNGKey(0)
    k_feat, k_param = jax.random.split(key)

    # Small shapes consistent with the forward: NCHW features flattened to (B, D).
    B, C, Hh, Ww = 2, 4, 16, 16          # D = 1024 (real module: D = 49920)
    features = jax.random.normal(k_feat, (B, C, Hh, Ww), jnp.float32)

    params = init_params(k_param, C * Hh * Ww)

    feats_flat, mean_out, interloss = avi_task2_forward(features, params)
    jax.block_until_ready((feats_flat, mean_out, interloss))

    # Sanity check against a pure-JAX reference.
    ref_flat, ref_mean, _ = _reference_forward(features, params)
    assert feats_flat.shape == (B, C * Hh * Ww)
    assert mean_out.shape == (B, OUT_DIM)
    assert jnp.allclose(feats_flat, ref_flat)
    assert jnp.allclose(mean_out, ref_mean, atol=1e-4, rtol=1e-3), (
        float(jnp.max(jnp.abs(mean_out - ref_mean))))
    assert float(interloss) == 0.0

    print("KERNEL_OK")
</pallas_src>

<mosaic_0001>
module attributes {stable_mosaic.version = 11 : i64} {
  func.func @_ensemble_mlp_kernel(%arg0: i32, %arg1: memref<2x1024xbf16, #tpu.memory_space<vmem>>, %arg2: memref<1x1024x128xbf16, #tpu.memory_space<vmem>>, %arg3: memref<32x1x128xf32, #tpu.memory_space<vmem>>, %arg4: memref<32x128x64xf32, #tpu.memory_space<vmem>>, %arg5: memref<32x1x64xf32, #tpu.memory_space<vmem>>, %arg6: memref<32x64x32xf32, #tpu.memory_space<vmem>>, %arg7: memref<32x1x32xf32, #tpu.memory_space<vmem>>, %arg8: memref<32x32x8xf32, #tpu.memory_space<vmem>>, %arg9: memref<32x1x8xf32, #tpu.memory_space<vmem>>, %arg10: memref<32x8x1xf32, #tpu.memory_space<vmem>>, %arg11: memref<32x1x1xf32, #tpu.memory_space<vmem>>, %arg12: memref<1x2x1xf32, #tpu.memory_space<vmem>>) attributes {dimension_semantics = [#tpu.dimension_semantics<parallel>], iteration_bounds = array<i64: 32>, scalar_prefetch = 0 : i64, scratch_operands = 0 : i64, tpu.core_type = #tpu.core_type<tc>, window_params = [{pipeline_mode = #tpu.pipeline_mode<synchronous>, transform_indices = @transform_0, window_bounds = array<i64: 2, 1024>}, {transform_indices = @transform_1, window_bounds = array<i64: 1, 1024, 128>}, {pipeline_mode = #tpu.pipeline_mode<synchronous>, transform_indices = @transform_2, window_bounds = array<i64: 32, 1, 128>}, {pipeline_mode = #tpu.pipeline_mode<synchronous>, transform_indices = @transform_3, window_bounds = array<i64: 32, 128, 64>}, {pipeline_mode = #tpu.pipeline_mode<synchronous>, transform_indices = @transform_4, window_bounds = array<i64: 32, 1, 64>}, {pipeline_mode = #tpu.pipeline_mode<synchronous>, transform_indices = @transform_5, window_bounds = array<i64: 32, 64, 32>}, {pipeline_mode = #tpu.pipeline_mode<synchronous>, transform_indices = @transform_6, window_bounds = array<i64: 32, 1, 32>}, {pipeline_mode = #tpu.pipeline_mode<synchronous>, transform_indices = @transform_7, window_bounds = array<i64: 32, 32, 8>}, {pipeline_mode = #tpu.pipeline_mode<synchronous>, transform_indices = @transform_8, window_bounds = array<i64: 32, 1, 8>}, {pipeline_mode = #tpu.pipeline_mode<synchronous>, transform_indices = @transform_9, window_bounds = array<i64: 32, 8, 1>}, {pipeline_mode = #tpu.pipeline_mode<synchronous>, transform_indices = @transform_10, window_bounds = array<i64: 32, 1, 1>}, {transform_indices = @transform_11, window_bounds = array<i64: 1, 2, 1>}]} {
    %c0 = arith.constant 0 : index
    %c0_0 = arith.constant 0 : index
    %0 = vector.load %arg1[%c0, %c0_0] : memref<2x1024xbf16, #tpu.memory_space<vmem>>, vector<2x1024xbf16>
    %c0_1 = arith.constant 0 : index
    %c0_2 = arith.constant 0 : index
    %c0_3 = arith.constant 0 : index
    %1 = vector.load %arg2[%c0_1, %c0_2, %c0_3] : memref<1x1024x128xbf16, #tpu.memory_space<vmem>>, vector<1x1024x128xbf16>
    %2 = vector.shape_cast %1 : vector<1x1024x128xbf16> to vector<1024x128xbf16>
    %cst = arith.constant dense<0.000000e+00> : vector<2x128xf32>
    %3 = tpu.matmul %0, %2, %cst {dimension_numbers = #tpu.dot_dimension_numbers<[1], [0], [0], [1], [0, 0, 1, 1], [], []>} : vector<2x1024xbf16>, vector<1024x128xbf16>, vector<2x128xf32> -> vector<2x128xf32>
    %4 = arith.index_cast %arg0 : i32 to index
    %c0_4 = arith.constant 0 : index
    %c0_5 = arith.constant 0 : index
    %5 = vector.load %arg3[%4, %c0_4, %c0_5] : memref<32x1x128xf32, #tpu.memory_space<vmem>>, vector<1x1x128xf32>
    %6 = vector.shape_cast %5 : vector<1x1x128xf32> to vector<1x128xf32>
    %7 = vector.broadcast %6 : vector<1x128xf32> to vector<2x128xf32>
    %8 = arith.addf %3, %7 : vector<2x128xf32>
    %cst_6 = arith.constant 0.000000e+00 : f32
    %9 = vector.broadcast %cst_6 : f32 to vector<2x128xf32>
    %10 = arith.maximumf %8, %9 : vector<2x128xf32>
    %11 = arith.index_cast %arg0 : i32 to index
    %c0_7 = arith.constant 0 : index
    %c0_8 = arith.constant 0 : index
    %12 = vector.load %arg4[%11, %c0_7, %c0_8] : memref<32x128x64xf32, #tpu.memory_space<vmem>>, vector<1x128x64xf32>
    %13 = vector.shape_cast %12 : vector<1x128x64xf32> to vector<128x64xf32>
    %cst_9 = arith.constant dense<0.000000e+00> : vector<2x64xf32>
    %14 = tpu.matmul %10, %13, %cst_9 {dimension_numbers = #tpu.dot_dimension_numbers<[1], [0], [0], [1], [0, 0, 1, 1], [], []>} : vector<2x128xf32>, vector<128x64xf32>, vector<2x64xf32> -> vector<2x64xf32>
    %15 = arith.index_cast %arg0 : i32 to index
    %c0_10 = arith.constant 0 : index
    %c0_11 = arith.constant 0 : index
    %16 = vector.load %arg5[%15, %c0_10, %c0_11] : memref<32x1x64xf32, #tpu.memory_space<vmem>>, vector<1x1x64xf32>
    %17 = vector.shape_cast %16 : vector<1x1x64xf32> to vector<1x64xf32>
    %18 = vector.broadcast %17 : vector<1x64xf32> to vector<2x64xf32>
    %19 = arith.addf %14, %18 : vector<2x64xf32>
    %cst_12 = arith.constant 0.000000e+00 : f32
    %20 = vector.broadcast %cst_12 : f32 to vector<2x64xf32>
    %21 = arith.maximumf %19, %20 : vector<2x64xf32>
    %22 = arith.index_cast %arg0 : i32 to index
    %c0_13 = arith.constant 0 : index
    %c0_14 = arith.constant 0 : index
    %23 = vector.load %arg6[%22, %c0_13, %c0_14] : memref<32x64x32xf32, #tpu.memory_space<vmem>>, vector<1x64x32xf32>
    %24 = vector.shape_cast %23 : vector<1x64x32xf32> to vector<64x32xf32>
    %cst_15 = arith.constant dense<0.000000e+00> : vector<2x32xf32>
    %25 = tpu.matmul %21, %24, %cst_15 {dimension_numbers = #tpu.dot_dimension_numbers<[1], [0], [0], [1], [0, 0, 1, 1], [], []>} : vector<2x64xf32>, vector<64x32xf32>, vector<2x32xf32> -> vector<2x32xf32>
    %26 = arith.index_cast %arg0 : i32 to index
    %c0_16 = arith.constant 0 : index
    %c0_17 = arith.constant 0 : index
    %27 = vector.load %arg7[%26, %c0_16, %c0_17] : memref<32x1x32xf32, #tpu.memory_space<vmem>>, vector<1x1x32xf32>
    %28 = vector.shape_cast %27 : vector<1x1x32xf32> to vector<1x32xf32>
    %29 = vector.broadcast %28 : vector<1x32xf32> to vector<2x32xf32>
    %30 = arith.addf %25, %29 : vector<2x32xf32>
    %cst_18 = arith.constant 0.000000e+00 : f32
    %31 = vector.broadcast %cst_18 : f32 to vector<2x32xf32>
    %32 = arith.maximumf %30, %31 : vector<2x32xf32>
    %33 = arith.index_cast %arg0 : i32 to index
    %c0_19 = arith.constant 0 : index
    %c0_20 = arith.constant 0 : index
    %34 = vector.load %arg8[%33, %c0_19, %c0_20] : memref<32x32x8xf32, #tpu.memory_space<vmem>>, vector<1x32x8xf32>
    %35 = vector.shape_cast %34 : vector<1x32x8xf32> to vector<32x8xf32>
    %cst_21 = arith.constant dense<0.000000e+00> : vector<2x8xf32>
    %36 = tpu.matmul %32, %35, %cst_21 {dimension_numbers = #tpu.dot_dimension_numbers<[1], [0], [0], [1], [0, 0, 1, 1], [], []>} : vector<2x32xf32>, vector<32x8xf32>, vector<2x8xf32> -> vector<2x8xf32>
    %37 = arith.index_cast %arg0 : i32 to index
    %c0_22 = arith.constant 0 : index
    %c0_23 = arith.constant 0 : index
    %38 = vector.load %arg9[%37, %c0_22, %c0_23] : memref<32x1x8xf32, #tpu.memory_space<vmem>>, vector<1x1x8xf32>
    %39 = vector.shape_cast %38 : vector<1x1x8xf32> to vector<1x8xf32>
    %40 = vector.broadcast %39 : vector<1x8xf32> to vector<2x8xf32>
    %41 = arith.addf %36, %40 : vector<2x8xf32>
    %cst_24 = arith.constant 0.000000e+00 : f32
    %42 = vector.broadcast %cst_24 : f32 to vector<2x8xf32>
    %43 = arith.maximumf %41, %42 : vector<2x8xf32>
    %44 = arith.index_cast %arg0 : i32 to index
    %c0_25 = arith.constant 0 : index
    %c0_26 = arith.constant 0 : index
    %45 = vector.load %arg10[%44, %c0_25, %c0_26] : memref<32x8x1xf32, #tpu.memory_space<vmem>>, vector<1x8x1xf32>
    %46 = vector.shape_cast %45 : vector<1x8x1xf32> to vector<8x1xf32>
    %cst_27 = arith.constant dense<0.000000e+00> : vector<2x1xf32>
    %47 = tpu.matmul %43, %46, %cst_27 {dimension_numbers = #tpu.dot_dimension_numbers<[1], [0], [0], [1], [0, 0, 1, 1], [], []>} : vector<2x8xf32>, vector<8x1xf32>, vector<2x1xf32> -> vector<2x1xf32>
    %48 = arith.index_cast %arg0 : i32 to index
    %c0_28 = arith.constant 0 : index
    %c0_29 = arith.constant 0 : index
    %49 = vector.load %arg11[%48, %c0_28, %c0_29] : memref<32x1x1xf32, #tpu.memory_space<vmem>>, vector<1x1x1xf32>
    %50 = vector.shape_cast %49 : vector<1x1x1xf32> to vector<1x1xf32>
    %51 = vector.broadcast %50 : vector<1x1xf32> to vector<2x1xf32>
    %52 = arith.addf %47, %51 : vector<2x1xf32>
    %c0_30 = arith.constant 0 : index
    %c0_31 = arith.constant 0 : index
    %c0_32 = arith.constant 0 : index
    %53 = vector.load %arg12[%c0_30, %c0_31, %c0_32] : memref<1x2x1xf32, #tpu.memory_space<vmem>>, vector<1x2x1xf32>
    %54 = vector.shape_cast %53 : vector<1x2x1xf32> to vector<2x1xf32>
    %55 = vector.shape_cast %52 : vector<2x1xf32> to vector<1x2x1xf32>
    tpu.vector_store %arg12[%c0_30, %c0_31, %c0_32], %55 {strides = array<i32>} : memref<1x2x1xf32, #tpu.memory_space<vmem>>, vector<1x2x1xf32>,
    return
  }
  func.func @transform_0(%arg0: i32) -> (i32, i32) {
    %c0_i32 = arith.constant 0 : i32
    %c0_i32_0 = arith.constant 0 : i32
    %c0_i32_1 = arith.constant 0 : i32
    return %c0_i32, %c0_i32_0 : i32, i32
  }
  func.func @transform_1(%arg0: i32) -> (i32, i32, i32) {
    %c0_i32 = arith.constant 0 : i32
    %c0_i32_0 = arith.constant 0 : i32
    %c0_i32_1 = arith.constant 0 : i32
    return %arg0, %c0_i32, %c0_i32_0 : i32, i32, i32
  }
  func.func @transform_2(%arg0: i32) -> (i32, i32, i32) {
    %c0_i32 = arith.constant 0 : i32
    %c0_i32_0 = arith.constant 0 : i32
    %c0_i32_1 = arith.constant 0 : i32
    %c0_i32_2 = arith.constant 0 : i32
    return %c0_i32, %c0_i32_0, %c0_i32_1 : i32, i32, i32
  }
  func.func @transform_3(%arg0: i32) -> (i32, i32, i32) {
    %c0_i32 = arith.constant 0 : i32
    %c0_i32_0 = arith.constant 0 : i32
    %c0_i32_1 = arith.constant 0 : i32
    %c0_i32_2 = arith.constant 0 : i32
    return %c0_i32, %c0_i32_0, %c0_i32_1 : i32, i32, i32
  }
  func.func @transform_4(%arg0: i32) -> (i32, i32, i32) {
    %c0_i32 = arith.constant 0 : i32
    %c0_i32_0 = arith.constant 0 : i32
    %c0_i32_1 = arith.constant 0 : i32
    %c0_i32_2 = arith.constant 0 : i32
    return %c0_i32, %c0_i32_0, %c0_i32_1 : i32, i32, i32
  }
  func.func @transform_5(%arg0: i32) -> (i32, i32, i32) {
    %c0_i32 = arith.constant 0 : i32
    %c0_i32_0 = arith.constant 0 : i32
    %c0_i32_1 = arith.constant 0 : i32
    %c0_i32_2 = arith.constant 0 : i32
    return %c0_i32, %c0_i32_0, %c0_i32_1 : i32, i32, i32
  }
  func.func @transform_6(%arg0: i32) -> (i32, i32, i32) {
    %c0_i32 = arith.constant 0 : i32
    %c0_i32_0 = arith.constant 0 : i32
    %c0_i32_1 = arith.constant 0 : i32
    %c0_i32_2 = arith.constant 0 : i32
    return %c0_i32, %c0_i32_0, %c0_i32_1 : i32, i32, i32
  }
  func.func @transform_7(%arg0: i32) -> (i32, i32, i32) {
    %c0_i32 = arith.constant 0 : i32
    %c0_i32_0 = arith.constant 0 : i32
    %c0_i32_1 = arith.constant 0 : i32
    %c0_i32_2 = arith.constant 0 : i32
    return %c0_i32, %c0_i32_0, %c0_i32_1 : i32, i32, i32
  }
  func.func @transform_8(%arg0: i32) -> (i32, i32, i32) {
    %c0_i32 = arith.constant 0 : i32
    %c0_i32_0 = arith.constant 0 : i32
    %c0_i32_1 = arith.constant 0 : i32
    %c0_i32_2 = arith.constant 0 : i32
    return %c0_i32, %c0_i32_0, %c0_i32_1 : i32, i32, i32
  }
  func.func @transform_9(%arg0: i32) -> (i32, i32, i32) {
    %c0_i32 = arith.constant 0 : i32
    %c0_i32_0 = arith.constant 0 : i32
    %c0_i32_1 = arith.constant 0 : i32
    %c0_i32_2 = arith.constant 0 : i32
    return %c0_i32, %c0_i32_0, %c0_i32_1 : i32, i32, i32
  }
  func.func @transform_10(%arg0: i32) -> (i32, i32, i32) {
    %c0_i32 = arith.constant 0 : i32
    %c0_i32_0 = arith.constant 0 : i32
    %c0_i32_1 = arith.constant 0 : i32
    %c0_i32_2 = arith.constant 0 : i32
    return %c0_i32, %c0_i32_0, %c0_i32_1 : i32, i32, i32
  }
  func.func @transform_11(%arg0: i32) -> (i32, i32, i32) {
    %c0_i32 = arith.constant 0 : i32
    %c0_i32_0 = arith.constant 0 : i32
    %c0_i32_1 = arith.constant 0 : i32
    return %arg0, %c0_i32, %c0_i32_0 : i32, i32, i32
  }
}

</mosaic_0001>

<bundles_post_ra>
// kernel: avi_task2_forward.1
= control target key start
LH: loop header
LB: loop body
LE: loop exit
PB: predicated region body
PF: predicated region fallthrough
CT: control target
= control target key end

     0   :  { %s2754_s0 = inlined_call_operand.vmem [shape: bf16[2,1024], index: 0, kind: input, shape index: {}]   ;;  %s2755_s1 = inlined_call_operand.hbm [shape: bf16[32,1024,128], index: 1, kind: input, shape index: {}]   ;;  %s2756_s2 = inlined_call_operand.hbm [shape: f32[32,1,128], index: 2, kind: input, shape index: {}]   ;;  %s2757_s3 = inlined_call_operand.vmem [shape: f32[32,128,64], index: 3, kind: input, shape index: {}]   ;;  %s2758_s4 = inlined_call_operand.hbm [shape: f32[32,1,64], index: 4, kind: input, shape index: {}]   ;;  %s2759_s5 = inlined_call_operand.vmem [shape: f32[32,64,32], index: 5, kind: input, shape index: {}]   ;;  %s2760_s6 = inlined_call_operand.hbm [shape: f32[32,1,32], index: 6, kind: input, shape index: {}]   ;;  %s2761_s7 = inlined_call_operand.vmem [shape: f32[32,32,8], index: 7, kind: input, shape index: {}]   ;;  %s2762_s8 = inlined_call_operand.vmem [shape: f32[32,1,8], index: 8, kind: input, shape index: {}]   ;;  %s2763_s9 = inlined_call_operand.vmem [shape: f32[32,8,1], index: 9, kind: input, shape index: {}]   ;;  %s2764_s10 = inlined_call_operand.vmem [shape: f32[32,1,1], index: 10, kind: input, shape index: {}]   ;;  %s2765_s11 = inlined_call_operand.vmem [shape: f32[32,2,1], index: 11, kind: output, shape index: {}]  }
   0x1   :  { %2769 = sst [smem:[#allocation12_spill]] %s2762_s8 }
   0x2   :  { %2770 = sst [smem:[#allocation13_spill]] %s2764_s10 }
   0x3   :  { %2771 = sst [smem:[#allocation14_spill]] %s2765_s11 }
   0x4   :  { %16 = vsyncpa [#allocation3], 0 }
   0x5   :  { %18 = vsyncpa [#allocation3 + $0x1], 0 }
   0x6   :  { %19 = vsyncpa [#allocation5], 0 }
   0x7   :  { %20 = vsyncpa [#allocation8], 0  ;;  %s2378_s17 = smov 0   ;;  %s2380_s18 = smov 0  }
   0x8   :  { %s2382_s19 = smov 0   ;;  %s2384_s20 = smov 0  }
   0x9 LB: > { %s2397_s21 = sadd.s32 4294967295, %s2304_s20   ;;  %p67_p0 = scmp.ne.s32.totalorder %s2296_s18, %s2292_s17  ;;  %s2304_s20 = sphi %s2384_s20, %s2790_s20   ;;  %s2300_s19 = sphi %s2382_s19, %s2789_s19   ;;  %s2296_s18 = sphi %s2380_s18, %s2788_s18   ;;  %s2292_s17 = sphi %s2378_s17, %s2787_s17  }
   0xa   : > { %p2766_p1 = scmp.eq.s32.totalorder %s2397_s21, 0  ;;  %p1664_p2 = scmp.ge.s32.totalorder %s2304_s20, 1 }
   0xb   : > { %p293_p3 = scmp.lt.s32.totalorder %s2304_s20, 33  ;;  %s2306_s24 = smov [#allocation4]  }
   0xc   : > { %p2405_p4 = por %p2766_p1, %p67_p0  ;;  %s308_s25 = sshll.u32 %s2306_s24, 4  ;;  %s2413_s25 = int_to_ptr.vmem [resolvable:$true] %s308_s25 }
   0xd   : > { %p2409_p5 = pnand %p1664_p2, %p293_p3  ;;  %s2307_s27 = smov [#allocation6]  }
   0xe   : > { %s2772_s22 = scalar_select %p2405_p4, 1, 0 }
   0xf   : > { %s2773_s23 = scalar_select %p2409_p5, 1, 0 }
  0x10   : > { %p2019_p6 = pneg %p2409_p5  ;;  %s324_s28 = sshll.u32 %s2307_s27, 4  ;;  %s2423_s28 = int_to_ptr.vmem [resolvable:$true] %s324_s28 }
  0x11   : > { %s2308_s29 = smov [#allocation7]   ;;  %s2148_s14 = scalar_lea.hbm %s2756_s2, 512 }
  0x12   : > { %p2419_p7 = pnand %p2019_p6, %p2766_p1  ;;  %s2425_s30 = sshll.u32 %s2308_s29, 4  ;;  %s341_s30 = int_to_ptr.vmem [resolvable:$true] %s2425_s30 }
  0x13   : > { %p2149_p8 = scmp.ne.s32.totalorder %s2756_s2, %s2148_s14  ;;  %p2155_p12 = scmp.lt.u32.totalorder %s2148_s14, %s2756_s2 }
  0x14   : > { %p2435_p9 = pneg %p2419_p7 }
  0x16   : > { %p2151_p10 = pnand %p2435_p9, %p2149_p8 }
  0x18   : > { %p2152_p11 = pneg %p2151_p10 }
  0x1a   : > { %p2157_p13 = pnand %p2155_p12, %p2152_p11 }
  0x1c   : > { %2160 = shalt.err (!%p2157_p13)
}
  0x1d   : > { %s2161_s29 = scalar_lea.vmem %s2413_s25, 512  ;;  %p2169_p6 = scmp.lt.s32.totalorder %s2413_s25, %s2413_s25 }
  0x1e   : > { %p2162_p0 = scmp.ne.s32.totalorder %s2413_s25, %s2161_s29  ;;  %p2170_p1 = scmp.lt.s32.totalorder %s2161_s29, %s2161_s29 }
  0x20   : > { %p2164_p2 = pnand %p2162_p0, %p2435_p9  ;;  %p2171_p8 = por %p2170_p1, %p2169_p6 }
  0x22   : > { %p2165_p3 = pneg %p2164_p2 }
  0x24   : > { %p2172_p10 = pnand %p2171_p8, %p2165_p3 }
  0x26   : > { %2175 = shalt.err (!%p2172_p10)
}
  0x27   : > { %s2309_s12 = smov 16   ;;  %s2310_s13 = smov 1  }
  0x28   : > { %2022 = dma.hbm_to_vmem [thread:$0]  (!%p2419_p7), %s2756_s2, 512, %s2413_s25, [#allocation5], %s2309_s12, %s2309_s12, %s2310_s13  }
  0x29   : > { %s2176_s27 = scalar_lea.hbm %s2758_s4, 512 }
  0x2a   : > { %p2177_p1 = scmp.ne.s32.totalorder %s2758_s4, %s2176_s27  ;;  %p2183_p13 = scmp.lt.u32.totalorder %s2176_s27, %s2758_s4 }
  0x2c   : > { %p2179_p11 = pnand %p2177_p1, %p2435_p9 }
  0x2e   : > { %p2180_p12 = pneg %p2179_p11 }
  0x30   : > { %p2185_p0 = pnand %p2183_p13, %p2180_p12 }
  0x32   : > { %2188 = shalt.err (!%p2185_p0)
}
  0x33   : > { %s2189_s25 = scalar_lea.vmem %s2423_s28, 512  ;;  %p2197_p8 = scmp.lt.s32.totalorder %s2423_s28, %s2423_s28 }
  0x34   : > { %p2190_p2 = scmp.ne.s32.totalorder %s2423_s28, %s2189_s25  ;;  %p2198_p10 = scmp.lt.s32.totalorder %s2189_s25, %s2189_s25 }
  0x36   : > { %p2192_p3 = pnand %p2190_p2, %p2435_p9  ;;  %p2199_p1 = por %p2198_p10, %p2197_p8 }
  0x38   : > { %p2193_p6 = pneg %p2192_p3 }
  0x3a   : > { %p2200_p11 = pnand %p2199_p1, %p2193_p6 }
  0x3c   : > { %2203 = shalt.err (!%p2200_p11)
}
  0x3d   : > { %2025 = dma.hbm_to_vmem [thread:$0]  (!%p2419_p7), %s2758_s4, 512, %s2423_s28, [#allocation5], %s2309_s12, %s2309_s12, %s2310_s13  }
  0x3e   : > { %s2204_s15 = scalar_lea.hbm %s2760_s6, 512 }
  0x3f   : > { %p2205_p12 = scmp.ne.s32.totalorder %s2760_s6, %s2204_s15  ;;  %p2211_p2 = scmp.lt.u32.totalorder %s2204_s15, %s2760_s6 }
  0x41   : > { %p2207_p13 = pnand %p2205_p12, %p2435_p9 }
  0x43   : > { %p2208_p0 = pneg %p2207_p13 }
  0x45   : > { %p2213_p3 = pnand %p2211_p2, %p2208_p0 }
  0x47   : > { %2216 = shalt.err (!%p2213_p3)
}
  0x48   : > { %s2217_s25 = scalar_lea.vmem %s341_s30, 512  ;;  %p2225_p1 = scmp.lt.s32.totalorder %s341_s30, %s341_s30 }
  0x49   : > { %p2218_p6 = scmp.ne.s32.totalorder %s341_s30, %s2217_s25  ;;  %p2226_p11 = scmp.lt.s32.totalorder %s2217_s25, %s2217_s25 }
  0x4b   : > { %p2220_p8 = pnand %p2218_p6, %p2435_p9  ;;  %p2227_p4 = por %p2226_p11, %p2225_p1 }
  0x4d   : > { %p2221_p10 = pneg %p2220_p8 }
  0x4f   : > { %p2228_p5 = pnand %p2227_p4, %p2221_p10 }
  0x51   : > { %2231 = shalt.err (!%p2228_p5)
}
  0x52   : > { %2028 = dma.hbm_to_vmem [thread:$0]  (!%p2419_p7), %s2760_s6, 512, %s341_s30, [#allocation8], %s2309_s12, %s2309_s12, %s2310_s13  }
  0x53   : > { %s2508_s17 = sadd.s32 1, %s2304_s20   ;;  %s54_s10 = sadd.s32 1, %s2300_s19 }
  0x54   : > { %s51_s26 = ssub.s32 %s2304_s20, %s2508_s17  ;;  %p61_p5 = scmp.ne.s32.totalorder %s2300_s19, %s2296_s18 }
  0x55   : > { %p52_p4 = scmp.eq.s32.totalorder %s51_s26, 0  ;;  %p62_p9 = scmp.eq.s32.totalorder %s2304_s20, 0 }
  0x56   : > { %p2036_p12 = scmp.lt.s32.totalorder %s2304_s20, 32  ;;  %s366_s14 = sand.u32 1, %s2300_s19  }
  0x57   : > { %s2518_s11 = scalar_select %p52_p4, %s2300_s19, %s54_s10  }
  0x58   : > { %p63_p13 = por %p62_p9, %p61_p5  ;;  %s1669_s15 = sshll.u32 %s366_s14, 9 }
  0x59   : > { %s1759_s16 = sshll.u32 %s2304_s20, 13  ;;  %s370_s30 = scalar_lea.vmem [#allocation2], %s1669_s15 }
  0x5a   : > { %s2525_s29 = scalar_lea.hbm %s2755_s1, %s1759_s16  ;;  %s377_s12 = sshll.u32 %s370_s30, 4  ;;  %s2527_s12 = int_to_ptr.vmem [resolvable:$true] %s377_s12 }
  0x5b   : > { %p2529_p7 = pnand %p2036_p12, %p63_p13  ;;  %s2533_s25 = scalar_lea.sflag [#allocation3], %s366_s14 }
  0x5c   : > { %s2232_s28 = scalar_lea.hbm %s2525_s29, 8192  ;;  %s2237_s10 = scalar_lea.hbm %s2755_s1, 262144 }
  0x5d   : > { %p2233_p0 = scmp.ne.s32.totalorder %s2525_s29, %s2232_s28  ;;  %p2234_p2 = pneg %p2529_p7 }
  0x5e   : > { %p2238_p8 = scmp.lt.u32.totalorder %s2525_s29, %s2755_s1  ;;  %p2239_p10 = scmp.lt.u32.totalorder %s2237_s10, %s2232_s28 }
  0x5f   : > { %p2235_p3 = pnand %p2234_p2, %p2233_p0  ;;  %p2241_p11 = scmp.lt.u32.totalorder %s2232_s28, %s2525_s29 }
  0x60   : > { %p2240_p1 = por %p2239_p10, %p2238_p8 }
  0x61   : > { %p2236_p6 = pneg %p2235_p3 }
  0x62   : > { %p2242_p4 = por %p2241_p11, %p2240_p1 }
  0x64   : > { %p2243_p5 = pnand %p2242_p4, %p2236_p6 }
  0x66   : > { %2246 = shalt.err (!%p2243_p5)
}
  0x67   : > { %s2247_s14 = scalar_lea.vmem %s2527_s12, 8192  ;;  %s2311_s24 = smov [#allocation2]  }
  0x68   : > { %p2248_p9 = scmp.ne.s32.totalorder %s2527_s12, %s2247_s14  ;;  %s2252_s27 = sshll.u32 %s2311_s24, 4  ;;  %s2253_s27 = int_to_ptr.vmem [resolvable:$false] %s2252_s27 }
  0x69   : > { %s2254_s30 = scalar_lea.vmem %s2253_s27, 16384  ;;  %p2255_p0 = scmp.lt.s32.totalorder %s2527_s12, %s2253_s27 }
  0x6a   : > { %p2250_p12 = pnand %p2248_p9, %p2234_p2  ;;  %p2256_p3 = scmp.lt.s32.totalorder %s2254_s30, %s2247_s14 }
  0x6c   : > { %p2251_p13 = pneg %p2250_p12  ;;  %p2257_p8 = por %p2256_p3, %p2255_p0 }
  0x6e   : > { %p2258_p10 = pnand %p2257_p8, %p2251_p13 }
  0x70   : > { %2261 = shalt.err (!%p2258_p10)
}
  0x71   : > { %s2312_s28 = smov 64   ;;  %s2313_s8 = smov 4  }
  0x72   : > { %2032 = dma.hbm_to_vmem [thread:$0]  (!%p2529_p7), %s2525_s29, 8192, %s2527_s12, %s2533_s25, %s2312_s28, %s2312_s28, %s2313_s8  }
  0x73   : > { %p2777_p2 = scmp.ne.s32.totalorder %s2773_s23, 0 }
  0x74   : > { %s391_s26 = sand.u32 (!%p2777_p2), 1, %s2296_s18   ;;  %p2778_p6 = scmp.ne.s32.totalorder (!%p2777_p2), %s2772_s22, 0 }
  0x75   : > { %389 = sbr.rel (%p2777_p2) target bundleno = 1281 (0x501), region = 64  ;;  %s1673_s10 = sshll.u32 (!%p2777_p2), %s391_s26, 9 }
  0x76   : > { %s392_s15 = scalar_lea.sflag (!%p2777_p2), [#allocation3], %s391_s26  ;;  %s2564_s16 = scalar_lea.vmem (!%p2777_p2), [#allocation2], %s1673_s10 }
  0x7c   : > { %2279 = dma.done.wait (%p2778_p6), %s392_s15, 8192  }
  0x7d   : > { %2281 = vsyncadd (%p2778_p6), %s392_s15, 4294959104  ;;  %p2779_p1 = scmp.eq.s32.totalorder %s2397_s21, 0 }
  0x7f   : > { %2283 = dma.done.wait (%p2779_p1), [#allocation5], 1024   ;;  %p2780_p7 = pmov %p2779_p1 }
  0x80   : > { %p2781_p11 = pmov %p2779_p1 }
  0x81   : > { %2285 = vsyncadd (%p2780_p7), [#allocation5], 4294966272 }
  0x82   : > { %2287 = dma.done.wait (%p2781_p11), [#allocation8], 512   ;;  %p2782_p4 = pmov %p2779_p1 }
  0x83   : > { %v2083_v0 = vld [vmem:[%s2564_s16 + $0x40] sm:$0xff]   ;;  %v2087_v4 = vld [vmem:[%s2564_s16 + $0x48] sm:$0xff]   ;;  %v2091_v8 = vld [vmem:[%s2564_s16 + $0x50] sm:$0xff]   ;;  %v2314_v22 = vmov 1966171168   ;;  %v592_v24 = vlaneseq  ;;  %s1744_s29 = sshll.u32 %s2397_s21, 7 }
  0x84   : > { %2289 = vsyncadd (%p2782_p4), [#allocation8], 4294966784  ;;  %v2084_v1 = vld [vmem:[%s2564_s16 + $0xc0] sm:$0xff]   ;;  %1772 = vmatprep.subr.bf16.mxu0 %v2083_v0  ;;  %v2088_v5 = vld [vmem:[%s2564_s16 + $0xc8] sm:$0xff]   ;;  %v590_v23 = vunpack.c.l.s4 %v2314_v22  ;;  %s2663_s25 = scalar_lea.vmem %s2757_s3, %s1744_s29  ;;  %vm2316_vm0 = vmmov 0   ;;  %s1747_s14 = sshll.u32 %s2397_s21, 6 }
  0x85   : > { %v2085_v2 = vld [vmem:[%s2564_s16] sm:$0xff]   ;;  %1794 = vmatprep.subr.bf16.mxu1 %v2084_v1  ;;  %v2089_v6 = vld [vmem:[%s2564_s16 + $0x8] sm:$0xff]   ;;  %v2092_v9 = vld [vmem:[%s2564_s16 + $0xd0] sm:$0xff]   ;;  %v593_v30 = vshrl.u32 %v592_v24, 7  ;;  %s2697_s30 = scalar_lea.vmem %s2759_s5, %s1747_s14  ;;  %s1760_s28 = scalar_lea.vmem [#allocation4], %s2304_s20  ;;  %vm1305_vm1 = vcmask 523264  }
  0x86   : > { %v2086_v3 = vld [vmem:[%s2564_s16 + $0x80] sm:$0xff]   ;;  %1773 = vmatpush3.bf16.msra.mxu0 %v2085_v2  ;;  %v2090_v7 = vld [vmem:[%s2564_s16 + $0x88] sm:$0xff]   ;;  %v2093_v10 = vld [vmem:[%s2564_s16 + $0x10] sm:$0xff]   ;;  %v591_v29 = vunpack.c.0.s8 %v590_v23  ;;  %s1751_s8 = sshll.u32 %s2397_s21, 5  ;;  %s1768_s22 = scalar_lea.vmem [#allocation7], %s2304_s20  ;;  %vm1394_vm2 = vcmask 261120  }
  0x87   : > { %1795 = vmatpush3.bf16.msra.mxu1 %v2086_v3  ;;  %1774 = vmatprep.subr.bf16.mxu0 %v2087_v4  ;;  %v2094_v11 = vld [vmem:[%s2564_s16 + $0x90] sm:$0xff]   ;;  %v2095_v12 = vld [vmem:[%s2564_s16 + $0x58] sm:$0xff]   ;;  %v2099_v16 = vld [vmem:[%s2564_s16 + $0x60] sm:$0xff]   ;;  %s1381_s15 = scalar_lea.vmem %s2761_s7, %s1751_s8  ;;  %s1754_s23 = sshll.u32 %s2397_s21, 3  ;;  %vm1480_vm3 = vcmask 64512   ;;  %vm1554_vm4 = vcmask 1024  }
  0x88   : > { %1796 = vmatprep.subr.bf16.mxu1 %v2088_v5  ;;  %v2096_v13 = vld [vmem:[%s2564_s16 + $0xd8] sm:$0xff]   ;;  %v2100_v17 = vld [vmem:[%s2564_s16 + $0xe0] sm:$0xff]   ;;  %v2103_v20 = vld [vmem:[%s2564_s16 + $0x68] sm:$0xff]   ;;  %v2608_v35 = vsub.s32 %v591_v29, %v593_v30  ;;  %s1470_s13 = scalar_lea.vmem %s2763_s9, %s1754_s23  ;;  %s2783_s14 = sld [smem:[#allocation12_spill]] }
  0x89   : > { %v2097_v14 = vld [vmem:[%s2564_s16 + $0x18] sm:$0xff]   ;;  %v2101_v18 = vld [vmem:[%s2564_s16 + $0x20] sm:$0xff]   ;;  %v2104_v21 = vld [vmem:[%s2564_s16 + $0xe8] sm:$0xff]   ;;  %p445_p5 = scmp.lt.s32.totalorder %s2397_s21, 31  ;;  %s2784_s8 = sld [smem:[#allocation13_spill]] }
  0x8a   : > { %1775 = vmatpush3.bf16.msra.mxu0 %v2089_v6  ;;  %v2098_v15 = vld [vmem:[%s2564_s16 + $0x98] sm:$0xff]   ;;  %v2102_v19 = vld [vmem:[%s2564_s16 + $0xa0] sm:$0xff]   ;;  %v2105_v25 = vld [vmem:[%s2564_s16 + $0x28] sm:$0xff]  }
  0x8b   : > { %1797 = vmatpush3.bf16.msra.mxu1 %v2090_v7  ;;  %1776 = vmatprep.subr.bf16.mxu0 %v2091_v8  ;;  %v2106_v26 = vld [vmem:[%s2564_s16 + $0xa8] sm:$0xff]   ;;  %v2107_v27 = vld [vmem:[%s2564_s16 + $0x70] sm:$0xff]   ;;  %v2111_v33 = vld [vmem:[%s2564_s16 + $0x78] sm:$0xff]   ;;  %s446_s27 = scalar_select %p445_p5, %s2397_s21, 31 }
  0x8c   : > { %1798 = vmatprep.subr.bf16.mxu1 %v2092_v9  ;;  %v2108_v28 = vld [vmem:[%s2564_s16 + $0xf0] sm:$0xff]   ;;  %v2112_v34 = vld [vmem:[%s2564_s16 + $0xf8] sm:$0xff]   ;;  %v450_v38 = vld [vmem:[%s2754_s0] sm:$0xff] }
  0x8d   : > { %v2109_v31 = vld [vmem:[%s2564_s16 + $0x30] sm:$0xff]   ;;  %v2113_v36 = vld [vmem:[%s2564_s16 + $0x38] sm:$0xff]   ;;  %v588_v39 = vcombine.high %v450_v38, %v450_v38  ;;  %v595_v40 = vrot.slane %v450_v38, %v2608_v35  ;;  %v2116_v41 = vld [vmem:[%s2564_s16 + $0x140] sm:$0xff]   ;;  %s1677_s10 = sshll.u32 %s446_s27, 1 }
  0x8e   : > { %1777 = vmatpush3.bf16.msra.mxu0 %v2093_v10  ;;  %v2110_v32 = vld [vmem:[%s2564_s16 + $0xb0] sm:$0xff]   ;;  %v2114_v37 = vld [vmem:[%s2564_s16 + $0xb8] sm:$0xff]   ;;  %v2117_v42 = vld [vmem:[%s2564_s16 + $0x1c0] sm:$0xff]   ;;  %s1386_s24 = scalar_lea.vmem %s2783_s14, %s2397_s21 }
  0x8f   : > { %1799 = vmatpush3.bf16.msra.mxu1 %v2094_v11  ;;  %1778 = vmatprep.subr.bf16.mxu0 %v2095_v12  ;;  %v603_v43 = vcombine.high %v595_v40, %v595_v40  ;;  %v611_v44 = vrot.slane %v595_v40, %v2608_v35  ;;  %v2620_v45 = vrot.slane %v588_v39, %v2608_v35  ;;  %v2118_v47 = vld [vmem:[%s2564_s16 + $0x100] sm:$0xff]   ;;  %v2120_v50 = vld [vmem:[%s2564_s16 + $0x148] sm:$0xff]   ;;  %v2124_v57 = vld [vmem:[%s2564_s16 + $0x150] sm:$0xff]   ;;  %s1472_s26 = scalar_lea.vmem %s2784_s8, %s2397_s21 }
  0x90   : > { %1800 = vmatprep.subr.bf16.mxu1 %v2096_v13  ;;  %v2119_v52 = vld [vmem:[%s2564_s16 + $0x180] sm:$0xff]   ;;  %v2121_v54 = vld [vmem:[%s2564_s16 + $0x1c8] sm:$0xff]   ;;  %v2125_v59 = vld [vmem:[%s2564_s16 + $0x1d0] sm:$0xff]  }
  0x91   : > { %v625_v46 = vrot.slane %v603_v43, %v2608_v35  ;;  %v604_v48 = vcombine.high %v2620_v45, %v2620_v45  ;;  %v633_v49 = vcombine.high %v611_v44, %v611_v44  ;;  %v2122_v55 = vld [vmem:[%s2564_s16 + $0x108] sm:$0xff]   ;;  %v2126_v60 = vld [vmem:[%s2564_s16 + $0x110] sm:$0xff]   ;;  %v2128_v61 = vld [vmem:[%s2564_s16 + $0x158] sm:$0xff]  }
  0x92   : > { %1779 = vmatpush3.bf16.msra.mxu0 %v2097_v14  ;;  %v2123_v58 = vld [vmem:[%s2564_s16 + $0x188] sm:$0xff]   ;;  %v2127_v62 = vld [vmem:[%s2564_s16 + $0x190] sm:$0xff]   ;;  %v2129_v63 = vld [vmem:[%s2564_s16 + $0x1d8] sm:$0xff]  }
  0x93   : > { %1801 = vmatpush3.bf16.msra.mxu1 %v2098_v15  ;;  %1780 = vmatprep.subr.bf16.mxu0 %v2099_v16  ;;  %v635_v51 = vcombine.high %v625_v46, %v625_v46  ;;  %v632_v53 = vrot.slane %v604_v48, %v2608_v35  ;;  %v2130_v0 = vld [vmem:[%s2564_s16 + $0x118] sm:$0xff]   ;;  %v2132_v1 = vld [vmem:[%s2564_s16 + $0x160] sm:$0xff]   ;;  %v2136_v5 = vld [vmem:[%s2564_s16 + $0x168] sm:$0xff]  }
  0x94   : > { %1802 = vmatprep.subr.bf16.mxu1 %v2100_v17  ;;  %1061 = vmatprep.mubr.bf16.mxu0 %v625_v46  ;;  %v2131_v2 = vld [vmem:[%s2564_s16 + $0x198] sm:$0xff]   ;;  %v2133_v3 = vld [vmem:[%s2564_s16 + $0x1e0] sm:$0xff]   ;;  %v2137_v7 = vld [vmem:[%s2564_s16 + $0x1e8] sm:$0xff]   ;;  %v618_v17 = vrot.slane %v2620_v45, %v2608_v35  ;;  %v2317_v45 = vmov 0.0  }
  0x95   : > { %1101 = vmatprep.mubr.bf16.mxu1 %v635_v51  ;;  %v636_v56 = vcombine.high %v632_v53, %v632_v53  ;;  %v2134_v4 = vld [vmem:[%s2564_s16 + $0x120] sm:$0xff]   ;;  %v2138_v8 = vld [vmem:[%s2564_s16 + $0x128] sm:$0xff]   ;;  %v2140_v9 = vld [vmem:[%s2564_s16 + $0x170] sm:$0xff]  }
  0x96   : > { %1781 = vmatpush3.bf16.msra.mxu0 %v2101_v18  ;;  %v2135_v6 = vld [vmem:[%s2564_s16 + $0x1a0] sm:$0xff]   ;;  %v2139_v10 = vld [vmem:[%s2564_s16 + $0x1a8] sm:$0xff]   ;;  %v2141_v11 = vld [vmem:[%s2564_s16 + $0x1f0] sm:$0xff]  }
  0x97   : > { %1803 = vmatpush3.bf16.msra.mxu1 %v2102_v19  ;;  %1782 = vmatprep.subr.bf16.mxu0 %v2103_v20  ;;  %v2142_v12 = vld [vmem:[%s2564_s16 + $0x130] sm:$0xff]   ;;  %v2144_v13 = vld [vmem:[%s2564_s16 + $0x178] sm:$0xff]   ;;  %v634_v19 = vcombine.high %v618_v17, %v618_v17  ;;  %v2315_v20 = vmov 0.0|0.0   ;;  %v1193_v22 = vld [vmem:[%s2663_s25 + $0x8] sm:$0xff] }
  0x98   : > { %1804 = vmatprep.subr.bf16.mxu1 %v2104_v21  ;;  %v2143_v14 = vld [vmem:[%s2564_s16 + $0x1b0] sm:$0xff]   ;;  %v2145_v15 = vld [vmem:[%s2564_s16 + $0x1f8] sm:$0xff]   ;;  %v1192_v21 = vld [vmem:[%s2663_s25] sm:$0xff] }
  0x99   : > { %v2146_v16 = vld [vmem:[%s2564_s16 + $0x138] sm:$0xff]   ;;  %v1194_v23 = vld [vmem:[%s2663_s25 + $0x10] sm:$0xff]  ;;  %v1964_v24 = vpack.c.bf16 %v1193_v22, %v1192_v21  ;;  %v1204_v39 = vld [vmem:[%s2663_s25 + $0x60] sm:$0xff] }
  0x9a   : > { %1783 = vmatpush3.bf16.msra.mxu0 %v2105_v25  ;;  %v2147_v18 = vld [vmem:[%s2564_s16 + $0x1b8] sm:$0xff]   ;;  %v1198_v30 = vld [vmem:[%s2663_s25 + $0x30] sm:$0xff]  ;;  %v1205_v40 = vld [vmem:[%s2663_s25 + $0x68] sm:$0xff]  ;;  %s1764_s16 = scalar_lea.vmem [#allocation6], %s2304_s20 }
  0x9b   : > { %1805 = vmatpush3.bf16.msra.mxu1 %v2106_v26  ;;  %1784 = vmatprep.subr.bf16.mxu0 %v2107_v27  ;;  %v1195_v25 = vld [vmem:[%s2663_s25 + $0x18] sm:$0xff]  ;;  %v1196_v27 = vld [vmem:[%s2663_s25 + $0x20] sm:$0xff]  ;;  %v1291_v48 = vld [vmem:[%s2697_s30 + $0x10] sm:$0xff] }
  0x9c   : > { %1806 = vmatprep.subr.bf16.mxu1 %v2108_v28  ;;  %v1967_v26 = vpack.c.bf16 %v1195_v25, %v1194_v23  ;;  %v1197_v28 = vld [vmem:[%s2663_s25 + $0x28] sm:$0xff]  ;;  %v1207_v43 = vld [vmem:[%s2663_s25 + $0x78] sm:$0xff]  ;;  %v1289_v46 = vld [vmem:[%s2697_s30] sm:$0xff] }
  0x9d   : > { %v1970_v29 = vpack.c.bf16 %v1197_v28, %v1196_v27  ;;  %v1767_v21 = vld [vmem:[%s1764_s16 - $0x1] ss:$0 sm:$0xff]  ;;  %v1382_v22 = vld [vmem:[%s1381_s15] sm:$0xff]  ;;  %v1383_v23 = vld [vmem:[%s1381_s15 + $0x8] sm:$0xff] }
  0x9e   : > { %1785 = vmatpush3.bf16.msra.mxu0 %v2109_v31  ;;  %v1199_v31 = vld [vmem:[%s2663_s25 + $0x38] sm:$0xff]  ;;  %v2000_v27 = vpack.c.bf16 %v1383_v23, %v1382_v22 }
  0x9f   : > { %1807 = vmatpush3.bf16.msra.mxu1 %v2110_v32  ;;  %1786 = vmatprep.subr.bf16.mxu0 %v2111_v33  ;;  %v1973_v32 = vpack.c.bf16 %v1199_v31, %v1198_v30  ;;  %v1200_v33 = vld [vmem:[%s2663_s25 + $0x40] sm:$0xff]  ;;  %v1385_v30 = vld [vmem:[%s1381_s15 + $0x18] sm:$0xff] }
  0xa0   : > { %1808 = vmatprep.subr.bf16.mxu1 %v2112_v34  ;;  %v1201_v34 = vld [vmem:[%s2663_s25 + $0x48] sm:$0xff] }
  0xa1   : > { %v1976_v35 = vpack.c.bf16 %v1201_v34, %v1200_v33 }
  0xa2   : > { %1787 = vmatpush3.bf16.msra.mxu0 %v2113_v36  ;;  %v1202_v36 = vld [vmem:[%s2663_s25 + $0x50] sm:$0xff] }
  0xa3   : > { %1809 = vmatpush3.bf16.msra.mxu1 %v2114_v37  ;;  %1816 = vmatprep.subr.bf16.mxu0 %v2116_v41  ;;  %v1203_v37 = vld [vmem:[%s2663_s25 + $0x58] sm:$0xff]  ;;  %v1982_v41 = vpack.c.bf16 %v1205_v40, %v1204_v39 }
  0xa4   : > { %1838 = vmatprep.subr.bf16.mxu1 %v2117_v42  ;;  %v1979_v38 = vpack.c.bf16 %v1203_v37, %v1202_v36  ;;  %v1206_v42 = vld [vmem:[%s2663_s25 + $0x70] sm:$0xff]  ;;  %v1752_v37 = vld [vmem:[%s1386_s24] ss:$0 sm:$0xff] }
  0xa5   : > { %1062 = vmatmul.mubr.bf16.vlgmr.msra.gmra.mrb[0].mxu0 %v611_v44  ;;  %v1985_v44 = vpack.c.bf16 %v1207_v43, %v1206_v42  ;;  %v1755_v42 = vld [vmem:[%s1472_s26] ss:$0 sm:$0xff] }
  0xa6   : > { %1817 = vmatpush3.bf16.msra.mxu0 %v2118_v47  ;;  %1102 = vmatmul.mubr.bf16.vlgmr.msra.gmra.mrb[0].mxu1 %v633_v49  ;;  %v1290_v47 = vld [vmem:[%s2697_s30 + $0x8] sm:$0xff] }
  0xa7   : > { %1818 = vmatprep.subr.bf16.mxu0 %v2120_v50  ;;  %1839 = vmatpush3.bf16.msra.mxu1 %v2119_v52  ;;  %v1988_v49 = vpack.c.bf16 %v1290_v47, %v1289_v46  ;;  %v1292_v50 = vld [vmem:[%s2697_s30 + $0x18] sm:$0xff]  ;;  %v1293_v52 = vld [vmem:[%s2697_s30 + $0x20] sm:$0xff] }
  0xa8   : > { %1141 = vmatprep.mubr.bf16.mxu0 %v632_v53  ;;  %1840 = vmatprep.subr.bf16.mxu1 %v2121_v54  ;;  %v1991_v51 = vpack.c.bf16 %v1292_v50, %v1291_v48  ;;  %v1294_v53 = vld [vmem:[%s2697_s30 + $0x28] sm:$0xff] }
  0xa9   : > { %1181 = vmatprep.mubr.bf16.mxu1 %v636_v56  ;;  %v1994_v54 = vpack.c.bf16 %v1294_v53, %v1293_v52  ;;  %v1763_v56 = vld [vmem:[%s1760_s28 - $0x1] ss:$0 sm:$0xff] }
  0xaa   : > { %1819 = vmatpush3.bf16.msra.mxu0 %v2122_v55 }
  0xab   : > { %1820 = vmatprep.subr.bf16.mxu0 %v2124_v57  ;;  %1841 = vmatpush3.bf16.msra.mxu1 %v2123_v58 }
  0xac   : > { %1842 = vmatprep.subr.bf16.mxu1 %v2125_v59 }
  0xae   : > { %1821 = vmatpush3.bf16.msra.mxu0 %v2126_v60 }
  0xaf   : > { %1822 = vmatprep.subr.bf16.mxu0 %v2128_v61  ;;  %1843 = vmatpush3.bf16.msra.mxu1 %v2127_v62 }
  0xb0   : > { %1844 = vmatprep.subr.bf16.mxu1 %v2129_v63 }
  0xb2   : > { %1823 = vmatpush3.bf16.msra.mxu0 %v2130_v0 }
  0xb3   : > { %1824 = vmatprep.subr.bf16.mxu0 %v2132_v1  ;;  %1845 = vmatpush3.bf16.msra.mxu1 %v2131_v2 }
  0xb4   : > { %1846 = vmatprep.subr.bf16.mxu1 %v2133_v3 }
  0xb6   : > { %1825 = vmatpush3.bf16.msra.mxu0 %v2134_v4 }
  0xb7   : > { %1826 = vmatprep.subr.bf16.mxu0 %v2136_v5  ;;  %1847 = vmatpush3.bf16.msra.mxu1 %v2135_v6 }
  0xb8   : > { %1848 = vmatprep.subr.bf16.mxu1 %v2137_v7 }
  0xba   : > { %1827 = vmatpush3.bf16.msra.mxu0 %v2138_v8 }
  0xbb   : > { %1828 = vmatprep.subr.bf16.mxu0 %v2140_v9  ;;  %1849 = vmatpush3.bf16.msra.mxu1 %v2139_v10 }
  0xbc   : > { %1850 = vmatprep.subr.bf16.mxu1 %v2141_v11 }
  0xbe   : > { %1829 = vmatpush3.bf16.msra.mxu0 %v2142_v12 }
  0xbf   : > { %1830 = vmatprep.subr.bf16.mxu0 %v2144_v13  ;;  %1851 = vmatpush3.bf16.msra.mxu1 %v2143_v14 }
  0xc0   : > { %1852 = vmatprep.subr.bf16.mxu1 %v2145_v15 }
  0xc2   : > { %1831 = vmatpush3.bf16.msra.mxu0 %v2146_v16 }
  0xc3   : > { %1853 = vmatpush3.bf16.msra.mxu1 %v2147_v18  ;;  %1963 = vmatprep.subr.bf16.mxu0 %v2315_v20  ;;  %v1296_v18 = vld [vmem:[%s2697_s30 + $0x38] sm:$0xff] }
  0xc4   : > { %1987 = vmatprep.subr.bf16.mxu1 %v2315_v20 }
  0xc5   : > { %1142 = vmatmul.mubr.bf16.vlgmr.msra.gmra.mrb[4].mxu0 %v618_v17  ;;  %v1295_v17 = vld [vmem:[%s2697_s30 + $0x30] sm:$0xff] }
  0xc6   : > { %1182 = vmatmul.mubr.bf16.vlgmr.msra.gmra.mrb[4].mxu1 %v634_v19  ;;  %1965 = vmatpush3.bf16.msra.mxu0 %v1964_v24  ;;  %v1997_v19 = vpack.c.bf16 %v1296_v18, %v1295_v17 }
  0xc7   : > { %1966 = vmatprep.subr.bf16.mxu0 %v2315_v20  ;;  %1925 = vmatprep.mubr.msk.f32.mxu0 %vm2316_vm0, %v2317_v45 }
  0xc8   : > { %1944 = vmatprep.mubr.msk.f32.mxu1 %vm2316_vm0, %v2317_v45  ;;  %1989 = vmatpush3.bf16.msra.mxu1 %v1988_v49 }
  0xc9   : > { %1990 = vmatprep.subr.bf16.mxu1 %v2315_v20 }
  0xca   : > { %1968 = vmatpush3.bf16.msra.mxu0 %v1967_v26 }
  0xcb   : > { %1969 = vmatprep.subr.bf16.mxu0 %v2315_v20 }
  0xcc   : > { %1992 = vmatpush3.bf16.msra.mxu1 %v1991_v51 }
  0xcd   : > { %1993 = vmatprep.subr.bf16.mxu1 %v2315_v20 }
  0xce   : > { %1971 = vmatpush3.bf16.msra.mxu0 %v1970_v29  ;;  %v1384_v29 = vld [vmem:[%s1381_s15 + $0x10] sm:$0xff] }
  0xcf   : > { %1972 = vmatprep.subr.bf16.mxu0 %v2315_v20  ;;  %v2003_v31 = vpack.c.bf16 %v1385_v30, %v1384_v29 }
  0xd0   : > { %1995 = vmatpush3.bf16.msra.mxu1 %v1994_v54 }
  0xd1   : > { %1996 = vmatprep.subr.bf16.mxu1 %v2315_v20 }
  0xd2   : > { %1974 = vmatpush3.bf16.msra.mxu0 %v1973_v32  ;;  %v1771_v32 = vld [vmem:[%s1768_s22 - $0x1] ss:$0 sm:$0xff]  ;;  %s2785_s22 = sld [smem:[#allocation14_spill]] }
  0xd3   : > { %1975 = vmatprep.subr.bf16.mxu0 %v2315_v20 }
  0xd4   : > { %1998 = vmatpush3.bf16.msra.mxu1 %v1997_v19 }
  0xd5   : > { %1999 = vmatprep.subr.bf16.mxu1 %v2315_v20 }
  0xd6   : > { %1977 = vmatpush3.bf16.msra.mxu0 %v1976_v35 }
  0xd7   : > { %1978 = vmatprep.subr.bf16.mxu0 %v2315_v20 }
  0xd8   : > { %s448_s23 = scalar_lea.vmem %s2785_s22, %s1677_s10 }
  0xda   : > { %1980 = vmatpush3.bf16.msra.mxu0 %v1979_v38 }
  0xdb   : > { %1981 = vmatprep.subr.bf16.mxu0 %v2315_v20 }
  0xde   : > { %1983 = vmatpush3.bf16.msra.mxu0 %v1982_v41 }
  0xdf   : > { %1984 = vmatprep.subr.bf16.mxu0 %v2315_v20 }
  0xe2   : > { %1986 = vmatpush3.bf16.msra.mxu0 %v1985_v44 }
 0x178   : > { %v1788_v55 = vpop.f32.mrb[0].mxu0 }
 0x179   : > { %v1789_v57 = vpop.f32.mrb[1].mxu0  ;;  %v1810_v58 = vpop.f32.mrb[0].mxu1 }
 0x17a   : > { %v1790_v59 = vadd.f32 %v1789_v57, %v1788_v55  ;;  %v1791_v60 = vpop.f32.mrb[2].mxu0  ;;  %v1811_v61 = vpop.f32.mrb[1].mxu1 }
 0x17b   : > { %v1792_v62 = vpop.f32.mrb[3].mxu0  ;;  %v1812_v0 = vadd.f32 %v1811_v61, %v1810_v58  ;;  %v1813_v1 = vpop.f32.mrb[2].mxu1 }
 0x17c   : > { %v1064_v63 = vadd.f32 %v1790_v59, %v1763_v56  ;;  %v1814_v2 = vpop.f32.mrb[3].mxu1 }
 0x17e   : > { %v1104_v3 = vadd.f32 %v1812_v0, %v1064_v63 }
 0x198   : > { %v1832_v4 = vpop.f32.mrb[4].mxu0 }
 0x199   : > { %v1833_v5 = vpop.f32.mrb[5].mxu0  ;;  %v1854_v6 = vpop.f32.mrb[4].mxu1 }
 0x19a   : > { %v1834_v7 = vadd.f32 %v1833_v5, %v1832_v4  ;;  %v1835_v8 = vpop.f32.mrb[6].mxu0  ;;  %v1855_v9 = vpop.f32.mrb[5].mxu1 }
 0x19b   : > { %v1836_v10 = vpop.f32.mrb[7].mxu0  ;;  %v1856_v12 = vadd.f32 %v1855_v9, %v1854_v6  ;;  %v1857_v13 = vpop.f32.mrb[6].mxu1 }
 0x19c   : > { %v1144_v11 = vadd.f32 %v1834_v7, %v1104_v3  ;;  %v1858_v14 = vpop.f32.mrb[7].mxu1 }
 0x19e   : > { %v1184_v15 = vadd.f32 %v1856_v12, %v1144_v11 }
 0x1a0   : > { %v1189_v16 = vmax.f32 %v1184_v15, 0.0 }
 0x1a2   : > { %1926 = vmatmul.mubr.f32.vlgmr.msra.gmra.mrb[8].mxu0 %v1189_v16 }
 0x275   : > { %v1282_v24 = vpop.f32.mrb[8].mxu0 }
 0x276   : > { %v1283_v25 = vadd.f32 %v1767_v21, %v1282_v24  ;;  %v1927_v26 = vpop.f32.mrb[9].mxu0 }
 0x278   : > { %v1286_v28 = vmax.f32 %v1283_v25, 0.0 }
 0x27a   : > { %1945 = vmatmul.mubr.msk.f32.vlgmr.msra.gmra.mrb[8].mxu1 %vm1305_vm1, %v1286_v28 }
 0x27b   : > { %2001 = vmatpush3.bf16.msra.mxu1 %v2000_v27  ;;  %1955 = vmatprep.mubr.msk.f32.mxu1 %vm2316_vm0, %v2317_v45 }
 0x27c   : > { %2002 = vmatprep.subr.bf16.mxu1 %v2315_v20  ;;  %v1471_v20 = vld [vmem:[%s1470_s13] sm:$0xff] }
 0x27f   : > { %2004 = vmatpush3.bf16.msra.mxu1 %v2003_v31 }
 0x280   : > { %1958 = vmatprep.subr.mxu1 %v2317_v45 }
 0x34d   : > { %v1375_v33 = vpop.f32.mrb[8].mxu1 }
 0x34e   : > { %v1376_v34 = vadd.f32 %v1771_v32, %v1375_v33  ;;  %v1946_v35 = vpop.f32.mrb[9].mxu1 }
 0x350   : > { %v1379_v36 = vmax.f32 %v1376_v34, 0.0 }
 0x352   : > { %1956 = vmatmul.mubr.msk.f32.vlgmr.msra.gmra.mrb[10].mxu1 %vm1394_vm2, %v1379_v36 }
 0x353   : > { %1960 = vmatprep.mubr.msk.f32.mxu1 %vm2316_vm0, %v2317_v45  ;;  %1959 = vmatpush3.msra.mxu1 %v1471_v20 }
 0x425   : > { %v1464_v38 = vpop.f32.mrb[10].mxu1 }
 0x426   : > { %v1465_v39 = vadd.f32 %v1752_v37, %v1464_v38  ;;  %v1957_v40 = vpop.f32.mrb[11].mxu1 }
 0x428   : > { %v1468_v41 = vmax.f32 %v1465_v39, 0.0 }
 0x42a   : > { %1961 = vmatmul.mubr.msk.f32.vlgmr.msra.gmra.mrb[12].mxu1 %vm1480_vm3, %v1468_v41 }
 0x4fd   : > { %v1550_v43 = vpop.f32.mrb[12].mxu1 }
 0x4fe   : > { %v1551_v44 = vadd.f32 %v1755_v42, %v1550_v43  ;;  %v1962_v45 = vpop.f32.mrb[13].mxu1 }
 0x500   : > { %1555 = vst.msk [vmem:[%s448_s23] sm:$0x3] %vm1554_vm4, %v1551_v44 }
 0x501 PF: > { %s2786_s29 = smov %s2508_s17  ;;  %p23_p9 = scmp.ge.s32.totalorder %s2508_s17, 34  }
 0x502   : > { %s2787_s17 = smov %s2296_s18  ;;  %s2788_s18 = smov %s2300_s19 }
 0x503   : > { %s2789_s19 = smov %s2518_s11  ;;  %s2790_s20 = smov %s2786_s29 }
 0x504   :  { %25 = sbr.rel (!%p23_p9) target bundleno = 9 (0x9), region = 125 }
 0x50b   :  { %1575 = vsyncpa [#allocation3], 1 }
 0x50c   :  { %1577 = vsyncpa [#allocation3 + $0x1], 1 }
 0x50d   :  { %1578 = vsyncpa [#allocation5], 1 }
 0x50e   :  { %1579 = vsyncpa [#allocation8], 1 }

</bundles_post_ra>
